<compile_context>
chip_gen: v6e
topology: v6e:2x2x1
jax: 0.10.0
libtpu: 0.0.40
codegen_flags: <defaults>
</compile_context>

<pallas_src>
import jax
import jax.numpy as jnp
from jax.experimental import pallas as pl
from jax.experimental.pallas import tpu as pltpu

_LANE = 128                      # pairs per output row (lane-dense output)
_MAX_TILE_ROWS = 16              # up to 16*128 = 2048 pairs per grid step
_ONEHOT_MAX_NODES = 4096         # one-hot MXU gather only for small/medium tables
_ONEHOT_BYTES_BUDGET = 4 << 20   # cap on a single one-hot intermediate


def _round_up(x, m):
    return (x + m - 1) // m * m


def _mf_onehot_kernel(n1_ref, n2_ref, table_ref, out_ref):
    """One batch tile: gather rows via one-hot matmuls, multiply, reduce.

    n1_ref / n2_ref : VMEM (1, rows, 128) int32   -- per-tile index blocks
    table_ref       : VMEM (n_nodes, n_factors)   -- full table, single-buffered
    out_ref         : VMEM (1, rows, 128) f32     -- lane-dense dot products
    """
    rows = out_ref.shape[1]
    n_nodes = table_ref.shape[0]

    tbl = table_ref[...]
    if tbl.dtype == jnp.float32:
        # One-hot entries are exactly 0/1, so a HIGHEST-precision f32 matmul
        # reproduces the f32 table rows exactly (bf16x3 pieces re-sum exactly).
        oh_dtype, prec = jnp.float32, jax.lax.Precision.HIGHEST
    else:
        # bf16 table: multiply in bf16 on the MXU, accumulate in f32.
        oh_dtype, prec = tbl.dtype, None

    idx1 = n1_ref[0]                       # (rows, 128) int32, lane-dense
    idx2 = n2_ref[0]
    node_iota = jax.lax.broadcasted_iota(jnp.int32, (n_nodes, _LANE), 0)

    contract = (((0,), (0,)), ((), ()))    # table.T @ one_hot

    for r in range(rows):                  # static unroll, rows <= 16
        # (n_nodes, 128) one-hot columns for this group of 128 pairs.
        oh1 = (node_iota == idx1[r:r + 1, :]).astype(oh_dtype)
        oh2 = (node_iota == idx2[r:r + 1, :]).astype(oh_dtype)
        # MXU gather: (n_factors, 128) = gathered embedding rows, transposed.
        e1t = jax.lax.dot_general(tbl, oh1, contract,
                                  preferred_element_type=jnp.float32,
                                  precision=prec)
        e2t = jax.lax.dot_general(tbl, oh2, contract,
                                  preferred_element_type=jnp.float32,
                                  precision=prec)
        # Fused per-group reduction over factors (sublane reduce) -> (1, 128).
        out_ref[0, pl.ds(r, 1), :] = jnp.sum(e1t * e2t, axis=0, keepdims=True)


def matrix_factorization_forward(node_factors, node1, node2):
    """node_factors: (n_nodes, n_factors) f32/bf16; node1, node2: (batch,) ints."""
    n_nodes, n_factors = node_factors.shape
    batch = node1.shape[0]

    # Per-generation VMEM ceiling (v5e/v6e: 128 MiB; v7x: 64 MiB per TensorCore).
    try:
        vmem_cap = int(pltpu.get_tpu_info().vmem_capacity_bytes)
    except Exception:
        vmem_cap = 64 << 20                      # conservative: v7x per-core VMEM
    vmem_ceiling = (vmem_cap // 8) * 7           # leave headroom for the compiler

    # Layout-padded resident footprint of the table (sublane x 128-lane padding).
    itemsize = node_factors.dtype.itemsize
    sublane = max(8, 32 // itemsize)             # 8 for f32, 16 for bf16
    table_vmem = _round_up(n_nodes, sublane) * _round_up(n_factors, _LANE) * itemsize

    # Tile sizing: lane-dense (rows, 128) output blocks; cap rows so per-tile
    # one-hot intermediates stay within budget as n_nodes grows.
    n_nodes_pad = _round_up(n_nodes, _LANE)
    rows_cap = max(1, min(_MAX_TILE_ROWS,
                          _ONEHOT_BYTES_BUDGET // (n_nodes_pad * _LANE * 4)))
    rows_total = pl.cdiv(batch, _LANE)
    rows = max(1, min(rows_total, rows_cap))
    num_tiles = pl.cdiv(rows_total, rows)
    tile_b = rows * _LANE
    padded = num_tiles * tile_b

    # Per-step working set: one-hots + gathered slabs + index/output blocks.
    compute_vmem = (4 * n_nodes_pad * _LANE * 4
                    + 4 * _round_up(n_factors, 8) * _LANE * 4)
    io_vmem = 3 * 2 * rows * _LANE * 4           # node1, node2, out (double-buffered)
    vmem_limit = int(min(max(table_vmem + compute_vmem + io_vmem + (4 << 20),
                             16 << 20),
                         vmem_ceiling))

    if n_nodes > _ONEHOT_MAX_NODES or table_vmem + compute_vmem + (8 << 20) > vmem_ceiling:
        # TODO(synk): large tables -- keep node_factors in HBM (memory_space=pl.ANY)
        # and gather rows with a >=4-deep manual make_async_copy DMA ring instead
        # of the VMEM-resident one-hot MXU gather.
        raise NotImplementedError(
            f"n_nodes={n_nodes} too large for the VMEM-resident one-hot gather path")

    # Indices: cast + clamp once (an OOB one-hot would silently produce zeros;
    # torch would raise), pad the batch with index 0, reshape to tile blocks.
    node1 = jnp.clip(node1.astype(jnp.int32), 0, n_nodes - 1)
    node2 = jnp.clip(node2.astype(jnp.int32), 0, n_nodes - 1)
    if padded != batch:
        node1 = jnp.pad(node1, (0, padded - batch))
        node2 = jnp.pad(node2, (0, padded - batch))
    node1 = node1.reshape(num_tiles, rows, _LANE)
    node2 = node2.reshape(num_tiles, rows, _LANE)

    grid_spec = pltpu.PrefetchScalarGridSpec(
        num_scalar_prefetch=0,
        grid=(num_tiles,),
        in_specs=[
            pl.BlockSpec((1, rows, _LANE), lambda i: (i, 0, 0)),
            pl.BlockSpec((1, rows, _LANE), lambda i: (i, 0, 0)),
            # Full table VMEM-resident; constant across grid steps -> single buffer.
            pl.BlockSpec((n_nodes, n_factors), lambda i: (0, 0),
                         pipeline_mode=pl.Buffered(1)),
        ],
        out_specs=pl.BlockSpec((1, rows, _LANE), lambda i: (i, 0, 0)),
    )

    out = pl.pallas_call(
        _mf_onehot_kernel,
        out_shape=jax.ShapeDtypeStruct((num_tiles, rows, _LANE), jnp.float32),
        grid_spec=grid_spec,
        compiler_params=pltpu.CompilerParams(
            dimension_semantics=("parallel",),   # batch tiles -> 2 TCs on v7x
            vmem_limit_bytes=vmem_limit,
        ),
    )(node1, node2, node_factors)

    # Lane-dense (num_tiles, rows, 128) -> (batch,)
    return out.reshape(padded)[:batch]


if __name__ == "__main__":
    key = jax.random.PRNGKey(0)
    k_table, k_n1, k_n2 = jax.random.split(key, 3)

    # Small shapes matching the module (Embedding(n_nodes, n_factors=64)).
    n_nodes, n_factors, batch = 16, 64, 8
    node_factors = jax.random.normal(k_table, (n_nodes, n_factors), dtype=jnp.float32)
    node1 = jax.random.randint(k_n1, (batch,), 0, n_nodes, dtype=jnp.int32)
    node2 = jax.random.randint(k_n2, (batch,), 0, n_nodes, dtype=jnp.int32)

    out = jax.block_until_ready(matrix_factorization_forward(node_factors, node1, node2))
    ref = jnp.sum(node_factors[node1] * node_factors[node2], axis=1)
    assert out.shape == (batch,)
    assert jnp.allclose(out, ref, atol=1e-5, rtol=1e-5), (out, ref)

    # Second check: multi-tile grid + batch padding (2500 pairs -> 2 tiles of 2048).
    batch2 = 2500
    k_n3, k_n4 = jax.random.split(k_n1)
    node1b = jax.random.randint(k_n3, (batch2,), 0, n_nodes, dtype=jnp.int32)
    node2b = jax.random.randint(k_n4, (batch2,), 0, n_nodes, dtype=jnp.int32)
    out2 = jax.block_until_ready(matrix_factorization_forward(node_factors, node1b, node2b))
    ref2 = jnp.sum(node_factors[node1b] * node_factors[node2b], axis=1)
    assert out2.shape == (batch2,)
    assert jnp.allclose(out2, ref2, atol=1e-5, rtol=1e-5)

    print("KERNEL_OK")
</pallas_src>

<mosaic_0001>
module attributes {stable_mosaic.version = 11 : i64} {
  func.func @_mf_onehot_kernel(%arg0: i32, %arg1: memref<1x1x128xi32, #tpu.memory_space<vmem>>, %arg2: memref<1x1x128xi32, #tpu.memory_space<vmem>>, %arg3: memref<16x64xf32, #tpu.memory_space<vmem>>, %arg4: memref<1x1x128xf32, #tpu.memory_space<vmem>>) attributes {dimension_semantics = [#tpu.dimension_semantics<parallel>], iteration_bounds = array<i64: 1>, scalar_prefetch = 0 : i64, scratch_operands = 0 : i64, tpu.core_type = #tpu.core_type<tc>, window_params = [{transform_indices = @transform_0, window_bounds = array<i64: 1, 1, 128>}, {transform_indices = @transform_1, window_bounds = array<i64: 1, 1, 128>}, {pipeline_mode = #tpu.pipeline_mode<synchronous>, transform_indices = @transform_2, window_bounds = array<i64: 16, 64>}, {transform_indices = @transform_3, window_bounds = array<i64: 1, 1, 128>}]} {
    %c0 = arith.constant 0 : index
    %c0_0 = arith.constant 0 : index
    %0 = vector.load %arg3[%c0, %c0_0] : memref<16x64xf32, #tpu.memory_space<vmem>>, vector<16x64xf32>
    %c0_1 = arith.constant 0 : index
    %c0_2 = arith.constant 0 : index
    %c0_3 = arith.constant 0 : index
    %1 = vector.load %arg1[%c0_1, %c0_2, %c0_3] : memref<1x1x128xi32, #tpu.memory_space<vmem>>, vector<1x1x128xi32>
    %2 = vector.shape_cast %1 : vector<1x1x128xi32> to vector<1x128xi32>
    %c0_4 = arith.constant 0 : index
    %c0_5 = arith.constant 0 : index
    %c0_6 = arith.constant 0 : index
    %3 = vector.load %arg2[%c0_4, %c0_5, %c0_6] : memref<1x1x128xi32, #tpu.memory_space<vmem>>, vector<1x1x128xi32>
    %4 = vector.shape_cast %3 : vector<1x1x128xi32> to vector<1x128xi32>
    %5 = tpu.iota {dimensions = array<i32: 0>} : vector<16x128xi32>
    %6 = vector.broadcast %2 : vector<1x128xi32> to vector<16x128xi32>
    %7 = arith.cmpi eq, %5, %6 : vector<16x128xi32>
    %8 = arith.extui %7 : vector<16x128xi1> to vector<16x128xi32>
    %9 = arith.sitofp %8 : vector<16x128xi32> to vector<16x128xf32>
    %10 = vector.broadcast %4 : vector<1x128xi32> to vector<16x128xi32>
    %11 = arith.cmpi eq, %5, %10 : vector<16x128xi32>
    %12 = arith.extui %11 : vector<16x128xi1> to vector<16x128xi32>
    %13 = arith.sitofp %12 : vector<16x128xi32> to vector<16x128xf32>
    %cst = arith.constant dense<0.000000e+00> : vector<64x128xf32>
    %14 = tpu.matmul %0, %9, %cst {dimension_numbers = #tpu.dot_dimension_numbers<[0], [0], [1], [1], [0, 1, 1, 1], [], []>, precision = #tpu.contract_precision<fp32>} : vector<16x64xf32>, vector<16x128xf32>, vector<64x128xf32> -> vector<64x128xf32>
    %cst_7 = arith.constant dense<0.000000e+00> : vector<64x128xf32>
    %15 = tpu.matmul %0, %13, %cst_7 {dimension_numbers = #tpu.dot_dimension_numbers<[0], [0], [1], [1], [0, 1, 1, 1], [], []>, precision = #tpu.contract_precision<fp32>} : vector<16x64xf32>, vector<16x128xf32>, vector<64x128xf32> -> vector<64x128xf32>
    %16 = arith.mulf %14, %15 : vector<64x128xf32>
    %cst_8 = arith.constant dense<0.000000e+00> : vector<128xf32>
    %17 = vector.multi_reduction <add>, %16, %cst_8 [0] : vector<64x128xf32> to vector<128xf32>
    %18 = vector.shape_cast %17 : vector<128xf32> to vector<1x128xf32>
    %c0_9 = arith.constant 0 : index
    %c0_10 = arith.constant 0 : index
    %c0_11 = arith.constant 0 : index
    %19 = vector.load %arg4[%c0_9, %c0_10, %c0_11] : memref<1x1x128xf32, #tpu.memory_space<vmem>>, vector<1x1x128xf32>
    %20 = vector.shape_cast %19 : vector<1x1x128xf32> to vector<1x128xf32>
    %21 = vector.shape_cast %18 : vector<1x128xf32> to vector<1x1x128xf32>
    tpu.vector_store %arg4[%c0_9, %c0_10, %c0_11], %21 {strides = array<i32>} : memref<1x1x128xf32, #tpu.memory_space<vmem>>, vector<1x1x128xf32>,
    return
  }
  func.func @transform_0(%arg0: i32) -> (i32, i32, i32) {
    %c0_i32 = arith.constant 0 : i32
    %c0_i32_0 = arith.constant 0 : i32
    %c0_i32_1 = arith.constant 0 : i32
    return %arg0, %c0_i32, %c0_i32_0 : i32, i32, i32
  }
  func.func @transform_1(%arg0: i32) -> (i32, i32, i32) {
    %c0_i32 = arith.constant 0 : i32
    %c0_i32_0 = arith.constant 0 : i32
    %c0_i32_1 = arith.constant 0 : i32
    return %arg0, %c0_i32, %c0_i32_0 : i32, i32, i32
  }
  func.func @transform_2(%arg0: i32) -> (i32, i32) {
    %c0_i32 = arith.constant 0 : i32
    %c0_i32_0 = arith.constant 0 : i32
    %c0_i32_1 = arith.constant 0 : i32
    return %c0_i32, %c0_i32_0 : i32, i32
  }
  func.func @transform_3(%arg0: i32) -> (i32, i32, i32) {
    %c0_i32 = arith.constant 0 : i32
    %c0_i32_0 = arith.constant 0 : i32
    %c0_i32_1 = arith.constant 0 : i32
    return %arg0, %c0_i32, %c0_i32_0 : i32, i32, i32
  }
}

</mosaic_0001>

<bundles_post_ra>
// kernel: tpu_custom_call.1
= control target key start
LH: loop header
LB: loop body
LE: loop exit
PB: predicated region body
PF: predicated region fallthrough
CT: control target
= control target key end

     0   :  { %8 = vsyncpa [#allocation3], 0  ;;  %s2560_s0 = inlined_call_operand.hbm [shape: s32[1,1,128], index: 0, kind: input, shape index: {}]   ;;  %s2561_s1 = inlined_call_operand.vmem [shape: s32[1,1,128], index: 1, kind: input, shape index: {}]   ;;  %s2562_s2 = inlined_call_operand.hbm [shape: f32[16,64], index: 2, kind: input, shape index: {}]   ;;  %s2563_s3 = inlined_call_operand.hbm [shape: f32[1,1,128], index: 3, kind: output, shape index: {}]  }
   0x1   :  { %9 = vsyncpa [#allocation6], 0 }
   0x2   :  { %10 = vsyncpa [#allocation4], 0  ;;  %s2086_s12 = smov [#allocation2]   ;;  %s2087_s14 = smov [#allocation5]  }
   0x3   :  { %s17_s13 = sshll.u32 %s2086_s12, 4  ;;  %s28_s15 = sshll.u32 %s2087_s14, 4  ;;  %s18_s13 = int_to_ptr.vmem [resolvable:$true] %s17_s13  ;;  %s29_s15 = int_to_ptr.vmem [resolvable:$true] %s28_s15 }
   0x4   :  { %s2028_s16 = scalar_lea.vmem %s18_s13, 16  ;;  %s2032_s17 = scalar_lea.vmem %s18_s13, 32 }
   0x5   :  { %p2029_p0 = scmp.ne.s32.totalorder %s18_s13, %s2028_s16  ;;  %p2033_p1 = scmp.lt.s32.totalorder %s18_s13, %s18_s13 }
   0x6   :  { %p2034_p2 = scmp.lt.s32.totalorder %s2032_s17, %s2028_s16 }
   0x8   :  { %p2035_p3 = por %p2034_p2, %p2033_p1 }
   0xa   :  { %p2036_p4 = pnand %p2035_p3, %p2029_p0 }
   0xc   :  { %2039 = shalt.err (!%p2036_p4)
}
   0xd   :  { %20 = dma.hbm_to_vmem [thread:$0]  %s2560_s0, 16, %s18_s13, [#allocation3]  }
   0xe   :  { %s2048_s20 = scalar_lea.vmem %s29_s15, 256  ;;  %p2053_p6 = scmp.lt.s32.totalorder %s29_s15, %s29_s15 }
   0xf   :  { %p2049_p5 = scmp.ne.s32.totalorder %s29_s15, %s2048_s20  ;;  %p2054_p7 = scmp.lt.s32.totalorder %s2048_s20, %s2048_s20 }
  0x11   :  { %p2055_p8 = por %p2054_p7, %p2053_p6 }
  0x13   :  { %p2056_p9 = pnand %p2055_p8, %p2049_p5 }
  0x15   :  { %2059 = shalt.err (!%p2056_p9)
}
  0x16   :  { %s2088_s21 = smov 128   ;;  %s2089_s22 = smov 8  }
  0x17   :  { %34 = dma.hbm_to_vmem [thread:$0]  %s2562_s2, 256, %s29_s15, [#allocation6], %s2088_s21, %s2088_s21, %s2089_s22  }
  0x18   :  { %2080 = dma.done.wait [#allocation3], 16  }
  0x19   :  { %2081 = vsyncadd [#allocation3], 4294967280 }
  0x1a   :  { %2082 = dma.done.wait [#allocation6], 256  }
  0x1b   :  { %2083 = vsyncadd [#allocation6], 4294967040  ;;  %v45_v0 = vlaneseq  ;;  %v41_v3 = vld [vmem:[#allocation5] sm:$0xff]  ;;  %v1683_v4 = vld [vmem:[#allocation2] ss:$0 sm:$0xff]  ;;  %v2090_v8 = vmov 0.0  }
  0x1c   :  { %68 = vxpose.xlu0.b32.start [1/2] (short) (narrow) %v41_v3, 64  ;;  %v42_v7 = vld [vmem:[#allocation5 + $0x8] sm:$0xff]  ;;  %v2091_v19 = vmov 1.0   ;;  %v1686_v20 = vld [vmem:[%s2561_s1] ss:$0 sm:$0xff]  ;;  %vm100_vm4 = vcmask 130048  }
  0x1d   :  { %v46_v1 = vshrl.u32 %v45_v0, 7  ;;  %s2092_s1 = smov [#allocation7]  }
  0x1e   :  { %s1673_s25 = sshll.u32 %s2092_s1, 4  ;;  %s1674_s25 = int_to_ptr.vmem [resolvable:$true] %s1673_s25 }
  0x1f   :  { %v47_v2 = vadd.s32 8, %v46_v1  ;;  %vm2119_vm0 = vcmp.eq.s32.totalorder %v46_v1, %v1683_v4  ;;  %vm2167_vm3 = vcmp.eq.s32.totalorder %v46_v1, %v1686_v20  ;;  %s2060_s26 = scalar_lea.vmem %s1674_s25, 16  ;;  %s2064_s27 = scalar_lea.vmem %s1674_s25, 32 }
  0x20   :  { %v1684_v10 = vsel %vm2119_vm0, 1.0, %v2090_v8  ;;  %69 = vxpose.xlu0.b32.end [2/2] (short) (narrow) %v42_v7, 64  ;;  %v2173_v24 = vsel %vm2167_vm3, 1.0, %v2090_v8  ;;  %p2061_p10 = scmp.ne.s32.totalorder %s1674_s25, %s2060_s26  ;;  %p2065_p11 = scmp.lt.s32.totalorder %s1674_s25, %s1674_s25 }
  0x21   :  { %vm2123_vm1 = vcmp.eq.s32.totalorder %v47_v2, %v1683_v4  ;;  %v2131_v12 = vsub.f32 %v1684_v10, %v1684_v10  ;;  %vm2159_vm2 = vcmp.eq.s32.totalorder %v47_v2, %v1686_v20  ;;  %p2066_p12 = scmp.lt.s32.totalorder %s2064_s27, %s2060_s26 }
  0x22   :  { %v1685_v9 = vsel %vm2123_vm1, 1.0, %v2090_v8  ;;  %1821 = vmatprep.subr.msk.mxu0 %vm2123_vm1, %v2091_v19  ;;  %v2165_v22 = vsel %vm2159_vm2, 1.0, %v2090_v8 }
  0x23   :  { %v302_v11 = vsub.f32 %v1685_v9, %v1685_v9  ;;  %v2136_v14 = vand.u32 4294901760, %v2131_v12  ;;  %1822 = vmatpush3.msk.msra.mxu0 %vm2123_vm1, %v2091_v19  ;;  %v2279_v4 = vsub.f32 %v2165_v22, %v2165_v22  ;;  %p2067_p13 = por %p2066_p12, %p2065_p11 }
  0x24   :  { %1823 = vmatprep.subr.msk.mxu0 %vm2119_vm0, %v2091_v19 }
  0x25   :  { %v2133_v13 = vand.u32 4294901760, %v302_v11  ;;  %v311_v16 = vsub.f32 %v2131_v12, %v2136_v14  ;;  %1824 = vmatpush3.msk.msra.mxu0 %vm2119_vm0, %v2091_v19  ;;  %p2068_p0 = pnand %p2067_p13, %p2061_p10 }
  0x26   :  { %1853 = vmatprep.subr.mxu0 %v302_v11 }
  0x27   :  { %v304_v15 = vsub.f32 %v302_v11, %v2133_v13  ;;  %v312_v18 = vand.u32 4294901760, %v311_v16  ;;  %v2297_v16 = vand.u32 4294901760, %v2279_v4 }
  0x29   :  { %v305_v17 = vand.u32 4294901760, %v304_v15 }
  0x2b   :  { %1837 = vmatprep.subr.mxu1 %v305_v17 }
  0x2c   :  { %1838 = vmatpush3.msra.mxu1 %v305_v17 }
  0x2d   :  { %1839 = vmatprep.subr.mxu1 %v312_v18 }
  0x2e   :  { %1840 = vmatpush3.msra.mxu1 %v312_v18 }
  0x2f   :  { %1869 = vmatprep.subr.msk.mxu1 %vm2123_vm1, %v2091_v19 }
  0x98   :  { %v84_v25 = vpop.trf.xlu0 }
  0x99   :  { %v102_v26 = vsel %vm100_vm4, %v84_v25, 0  ;;  %v1064_v25 = vsub.f32 %v2279_v4, %v2297_v16 }
  0x9a   :  { %v2176_v27 = vand.u32 4294901760, %v102_v26 }
  0x9c   :  { %v2179_v28 = vsub.f32 %v102_v26, %v2176_v27  ;;  %1841 = vmatprep.mubr.f32.mxu1 %v2176_v27  ;;  %v85_v29 = vpop.trf.xlu0 }
  0x9d   :  { %v105_v30 = vsel %vm100_vm4, %v85_v29, 0 }
  0x9e   :  { %v2183_v31 = vand.u32 4294901760, %v105_v30  ;;  %v2186_v32 = vand.u32 4294901760, %v2179_v28 }
  0xa0   :  { %v2189_v33 = vsub.f32 %v105_v30, %v2183_v31  ;;  %1842 = vmatmul.mubr.f32.vlgmr.msra.gmra.mxu1 %v2183_v31  ;;  %v86_v34 = vpop.trf.xlu0  ;;  %v195_v35 = vsub.f32 %v2179_v28, %v2186_v32  ;;  %v1065_v30 = vand.u32 4294901760, %v1064_v25 }
  0xa1   :  { %v108_v36 = vsel %vm100_vm4, %v86_v34, 0  ;;  %1870 = vmatpush3.msk.msra.mxu1 %vm2123_vm1, %v2091_v19  ;;  %v1069_v34 = vsub.f32 %v2173_v24, %v2173_v24 }
  0xa2   :  { %v2198_v37 = vand.u32 4294901760, %v108_v36  ;;  %v2200_v38 = vand.u32 4294901760, %v195_v35  ;;  %v2203_v39 = vand.u32 4294901760, %v2189_v33  ;;  %1871 = vmatprep.subr.msk.mxu1 %vm2119_vm0, %v2091_v19 }
  0xa3   :  { %1872 = vmatpush3.msk.msra.mxu1 %vm2119_vm0, %v2091_v19  ;;  %v2336_v6 = vand.u32 4294901760, %v1069_v34 }
  0xa4   :  { %v2212_v40 = vsub.f32 %v108_v36, %v2198_v37  ;;  %1825 = vmatprep.mubr.f32.mxu0 %v2200_v38  ;;  %1844 = vmatprep.mubr.f32.mxu1 %v2198_v37  ;;  %v87_v41 = vpop.trf.xlu0  ;;  %v205_v42 = vsub.f32 %v2189_v33, %v2203_v39 }
  0xa5   :  { %v111_v43 = vsel %vm100_vm4, %v87_v41, 0  ;;  %1901 = vmatprep.subr.msk.mxu1 %vm2123_vm1, %v2091_v19  ;;  %v1071_v5 = vsub.f32 %v1069_v34, %v2336_v6 }
  0xa6   :  { %v2222_v44 = vand.u32 4294901760, %v111_v43  ;;  %v2224_v45 = vand.u32 4294901760, %v205_v42  ;;  %v2227_v46 = vand.u32 4294901760, %v2212_v40 }
  0xa8   :  { %v2230_v47 = vsub.f32 %v111_v43, %v2222_v44  ;;  %1826 = vmatmul.mubr.f32.vlgmr.msra.gmra.mxu0 %v2224_v45  ;;  %1845 = vmatmul.mubr.f32.gmra.mxu1 %v2222_v44  ;;  %v88_v48 = vpop.trf.xlu0  ;;  %v215_v49 = vsub.f32 %v2212_v40, %v2227_v46 }
  0xa9   :  { %v114_v50 = vsel %vm100_vm4, %v88_v48, 0  ;;  %1854 = vmatpush3.msra.mxu0 %v302_v11 }
  0xaa   :  { %v2237_v51 = vand.u32 4294901760, %v114_v50  ;;  %v2239_v52 = vand.u32 4294901760, %v215_v49  ;;  %v2242_v53 = vand.u32 4294901760, %v2230_v47  ;;  %1855 = vmatprep.subr.mxu0 %v2131_v12 }
  0xab   :  { %1856 = vmatpush3.msra.mxu0 %v2131_v12 }
  0xac   :  { %v2247_v54 = vsub.f32 %v114_v50, %v2237_v51  ;;  %1828 = vmatprep.mubr.f32.mxu0 %v2239_v52  ;;  %1847 = vmatprep.mubr.f32.mxu1 %v2237_v51  ;;  %v89_v55 = vpop.trf.xlu0  ;;  %v225_v56 = vsub.f32 %v2230_v47, %v2242_v53 }
  0xad   :  { %v117_v57 = vsel %vm100_vm4, %v89_v55, 0  ;;  %1885 = vmatprep.subr.mxu0 %v2133_v13 }
  0xae   :  { %v2255_v58 = vand.u32 4294901760, %v117_v57  ;;  %v2257_v59 = vand.u32 4294901760, %v225_v56  ;;  %v2260_v60 = vand.u32 4294901760, %v2247_v54 }
  0xb0   :  { %v2263_v61 = vsub.f32 %v117_v57, %v2255_v58  ;;  %1829 = vmatmul.mubr.f32.gmra.mxu0 %v2257_v59  ;;  %1848 = vmatmul.mubr.f32.gmra.mxu1 %v2255_v58  ;;  %v90_v62 = vpop.trf.xlu0  ;;  %v235_v63 = vsub.f32 %v2247_v54, %v2260_v60 }
  0xb1   :  { %v120_v0 = vsel %vm100_vm4, %v90_v62, 0 }
  0xb2   :  { %v2270_v1 = vand.u32 4294901760, %v120_v0  ;;  %v2272_v2 = vand.u32 4294901760, %v235_v63  ;;  %v2275_v3 = vand.u32 4294901760, %v2263_v61 }
  0xb4   :  { %v2282_v7 = vsub.f32 %v120_v0, %v2270_v1  ;;  %1831 = vmatprep.mubr.f32.mxu0 %v2272_v2  ;;  %1850 = vmatprep.mubr.f32.mxu1 %v2270_v1  ;;  %v91_v8 = vpop.trf.xlu0  ;;  %v245_v9 = vsub.f32 %v2263_v61, %v2275_v3 }
  0xb5   :  { %v123_v10 = vsel %vm100_vm4, %v91_v8, 0 }
  0xb6   :  { %v2289_v11 = vand.u32 4294901760, %v123_v10  ;;  %v2291_v12 = vand.u32 4294901760, %v245_v9  ;;  %v2294_v15 = vand.u32 4294901760, %v2282_v7 }
  0xb8   :  { %v2300_v17 = vsub.f32 %v123_v10, %v2289_v11  ;;  %1832 = vmatmul.mubr.f32.gmra.mxu0 %v2291_v12  ;;  %1851 = vmatmul.mubr.f32.gmra.mxu1 %v2289_v11  ;;  %v255_v18 = vsub.f32 %v2282_v7, %v2294_v15 }
  0xb9   :  { %1873 = vmatprep.mubr.f32.mxu1 %v2186_v32 }
  0xba   :  { %v2307_v20 = vand.u32 4294901760, %v255_v18  ;;  %v2310_v22 = vand.u32 4294901760, %v2300_v17 }
  0xbc   :  { %1834 = vmatprep.mubr.f32.mxu0 %v2307_v20  ;;  %1874 = vmatmul.mubr.f32.vlgmr.msra.gmra.mxu1 %v2203_v39  ;;  %v265_v26 = vsub.f32 %v2300_v17, %v2310_v22 }
  0xbd   :  { %1876 = vmatprep.mubr.f32.mxu1 %v2227_v46  ;;  %1902 = vmatpush3.msk.msra.mxu1 %vm2123_vm1, %v2091_v19 }
  0xbe   :  { %v2322_v29 = vand.u32 4294901760, %v265_v26  ;;  %1903 = vmatprep.subr.msk.mxu1 %vm2119_vm0, %v2091_v19 }
  0xbf   :  { %1904 = vmatpush3.msk.msra.mxu1 %vm2119_vm0, %v2091_v19 }
  0xc0   :  { %1835 = vmatmul.mubr.f32.gmra.mxu0 %v2322_v29  ;;  %1877 = vmatmul.mubr.f32.gmra.mxu1 %v2242_v53 }
  0xc1   :  { %1857 = vmatprep.mubr.f32.mxu0 %v2179_v28  ;;  %1879 = vmatprep.mubr.f32.mxu1 %v2260_v60 }
  0xc2   :  { %1933 = vmatprep.subr.mxu1 %v1065_v30 }
  0xc4   :  { %1858 = vmatmul.mubr.f32.vlgmr.msra.gmra.mxu0 %v2189_v33  ;;  %1880 = vmatmul.mubr.f32.gmra.mxu1 %v2275_v3 }
  0xc5   :  { %1886 = vmatpush3.msra.mxu0 %v2133_v13  ;;  %1860 = vmatprep.mubr.f32.mxu0 %v2212_v40  ;;  %v1072_v13 = vand.u32 4294901760, %v1071_v5 }
  0xc6   :  { %1882 = vmatprep.mubr.f32.mxu1 %v2294_v15  ;;  %1887 = vmatprep.subr.mxu0 %v2136_v14 }
  0xc7   :  { %1888 = vmatpush3.msra.mxu0 %v2136_v14 }
  0xc8   :  { %1861 = vmatmul.mubr.f32.gmra.mxu0 %v2230_v47  ;;  %1883 = vmatmul.mubr.f32.gmra.mxu1 %v2310_v22 }
  0xc9   :  { %1863 = vmatprep.mubr.f32.mxu0 %v2247_v54  ;;  %1905 = vmatprep.mubr.f32.mxu1 %v2176_v27 }
  0xca   :  { %1917 = vmatprep.subr.msk.mxu0 %vm2159_vm2, %v2091_v19 }
  0xcc   :  { %1864 = vmatmul.mubr.f32.gmra.mxu0 %v2263_v61  ;;  %1906 = vmatmul.mubr.f32.vlgmr.msra.gmra.mxu1 %v2183_v31 }
  0xcd   :  { %1866 = vmatprep.mubr.f32.mxu0 %v2282_v7  ;;  %1908 = vmatprep.mubr.f32.mxu1 %v2198_v37 }
  0xce   :  { %1934 = vmatpush3.msra.mxu1 %v1065_v30 }
  0xcf   :  { %1935 = vmatprep.subr.mxu1 %v1072_v13 }
  0xd0   :  { %1867 = vmatmul.mubr.f32.gmra.mxu0 %v2300_v17  ;;  %1909 = vmatmul.mubr.f32.gmra.mxu1 %v2222_v44 }
  0xd1   :  { %1889 = vmatprep.mubr.f32.mxu0 %v2176_v27  ;;  %1911 = vmatprep.mubr.f32.mxu1 %v2237_v51 }
  0xd2   :  { %1936 = vmatpush3.msra.mxu1 %v1072_v13 }
  0xd3   :  { %1965 = vmatprep.subr.msk.mxu1 %vm2159_vm2, %v2091_v19 }
  0xd4   :  { %1890 = vmatmul.mubr.f32.vlgmr.msra.gmra.mxu0 %v2183_v31  ;;  %1912 = vmatmul.mubr.f32.gmra.mxu1 %v2255_v58 }
  0xd5   :  { %1918 = vmatpush3.msk.msra.mxu0 %vm2159_vm2, %v2091_v19  ;;  %1892 = vmatprep.mubr.f32.mxu0 %v2198_v37 }
  0xd6   :  { %1914 = vmatprep.mubr.f32.mxu1 %v2270_v1  ;;  %1919 = vmatprep.subr.msk.mxu0 %vm2167_vm3, %v2091_v19 }
  0xd7   :  { %1920 = vmatpush3.msk.msra.mxu0 %vm2167_vm3, %v2091_v19 }
  0xd8   :  { %1893 = vmatmul.mubr.f32.gmra.mxu0 %v2222_v44  ;;  %1915 = vmatmul.mubr.f32.gmra.mxu1 %v2289_v11 }
  0xd9   :  { %1895 = vmatprep.mubr.f32.mxu0 %v2237_v51  ;;  %1937 = vmatprep.mubr.f32.mxu1 %v2176_v27 }
  0xda   :  { %1949 = vmatprep.subr.mxu0 %v2279_v4 }
  0xdc   :  { %1896 = vmatmul.mubr.f32.gmra.mxu0 %v2255_v58  ;;  %1938 = vmatmul.mubr.f32.vlgmr.msra.gmra.mxu1 %v2183_v31 }
  0xdd   :  { %1898 = vmatprep.mubr.f32.mxu0 %v2270_v1  ;;  %1940 = vmatprep.mubr.f32.mxu1 %v2198_v37 }
  0xde   :  { %1966 = vmatpush3.msk.msra.mxu1 %vm2159_vm2, %v2091_v19 }
  0xdf   :  { %1967 = vmatprep.subr.msk.mxu1 %vm2167_vm3, %v2091_v19 }
  0xe0   :  { %1899 = vmatmul.mubr.f32.gmra.mxu0 %v2289_v11  ;;  %1941 = vmatmul.mubr.f32.gmra.mxu1 %v2222_v44 }
  0xe1   :  { %1921 = vmatprep.mubr.f32.mxu0 %v2200_v38  ;;  %1943 = vmatprep.mubr.f32.mxu1 %v2237_v51 }
  0xe2   :  { %1968 = vmatpush3.msk.msra.mxu1 %vm2167_vm3, %v2091_v19 }
  0xe3   :  { %1997 = vmatprep.subr.msk.mxu1 %vm2159_vm2, %v2091_v19 }
  0xe4   :  { %1922 = vmatmul.mubr.f32.vlgmr.msra.gmra.mxu0 %v2224_v45  ;;  %1944 = vmatmul.mubr.f32.gmra.mxu1 %v2255_v58 }
  0xe5   :  { %1950 = vmatpush3.msra.mxu0 %v2279_v4  ;;  %1924 = vmatprep.mubr.f32.mxu0 %v2239_v52 }
  0xe6   :  { %1946 = vmatprep.mubr.f32.mxu1 %v2270_v1  ;;  %1951 = vmatprep.subr.mxu0 %v1069_v34 }
  0xe7   :  { %1952 = vmatpush3.msra.mxu0 %v1069_v34 }
  0xe8   :  { %1925 = vmatmul.mubr.f32.gmra.mxu0 %v2257_v59  ;;  %1947 = vmatmul.mubr.f32.gmra.mxu1 %v2289_v11 }
  0xe9   :  { %1927 = vmatprep.mubr.f32.mxu0 %v2272_v2  ;;  %1969 = vmatprep.mubr.f32.mxu1 %v2186_v32 }
  0xea   :  { %1981 = vmatprep.subr.mxu0 %v2297_v16 }
  0xec   :  { %1928 = vmatmul.mubr.f32.gmra.mxu0 %v2291_v12  ;;  %1970 = vmatmul.mubr.f32.vlgmr.msra.gmra.mxu1 %v2203_v39 }
  0xed   :  { %1930 = vmatprep.mubr.f32.mxu0 %v2307_v20  ;;  %1972 = vmatprep.mubr.f32.mxu1 %v2227_v46 }
  0xee   :  { %1998 = vmatpush3.msk.msra.mxu1 %vm2159_vm2, %v2091_v19 }
  0xef   :  { %1999 = vmatprep.subr.msk.mxu1 %vm2167_vm3, %v2091_v19 }
  0xf0   :  { %1931 = vmatmul.mubr.f32.gmra.mxu0 %v2322_v29  ;;  %1973 = vmatmul.mubr.f32.gmra.mxu1 %v2242_v53 }
  0xf1   :  { %1953 = vmatprep.mubr.f32.mxu0 %v2179_v28  ;;  %1975 = vmatprep.mubr.f32.mxu1 %v2260_v60 }
  0xf2   :  { %2000 = vmatpush3.msk.msra.mxu1 %vm2167_vm3, %v2091_v19 }
  0xf4   :  { %1954 = vmatmul.mubr.f32.vlgmr.msra.gmra.mxu0 %v2189_v33  ;;  %1976 = vmatmul.mubr.f32.gmra.mxu1 %v2275_v3 }
  0xf5   :  { %1982 = vmatpush3.msra.mxu0 %v2297_v16  ;;  %1956 = vmatprep.mubr.f32.mxu0 %v2212_v40 }
  0xf6   :  { %1978 = vmatprep.mubr.f32.mxu1 %v2294_v15  ;;  %1983 = vmatprep.subr.mxu0 %v2336_v6 }
  0xf7   :  { %1984 = vmatpush3.msra.mxu0 %v2336_v6 }
  0xf8   :  { %1957 = vmatmul.mubr.f32.gmra.mxu0 %v2230_v47  ;;  %1979 = vmatmul.mubr.f32.gmra.mxu1 %v2310_v22 }
  0xf9   :  { %1959 = vmatprep.mubr.f32.mxu0 %v2247_v54  ;;  %2001 = vmatprep.mubr.f32.mxu1 %v2176_v27 }
  0xfc   :  { %1960 = vmatmul.mubr.f32.gmra.mxu0 %v2263_v61  ;;  %2002 = vmatmul.mubr.f32.vlgmr.msra.gmra.mxu1 %v2183_v31 }
  0xfd   :  { %1962 = vmatprep.mubr.f32.mxu0 %v2282_v7  ;;  %2004 = vmatprep.mubr.f32.mxu1 %v2198_v37 }
 0x100   :  { %1963 = vmatmul.mubr.f32.gmra.mxu0 %v2300_v17  ;;  %2005 = vmatmul.mubr.f32.gmra.mxu1 %v2222_v44 }
 0x101   :  { %1985 = vmatprep.mubr.f32.mxu0 %v2176_v27  ;;  %2007 = vmatprep.mubr.f32.mxu1 %v2237_v51 }
 0x104   :  { %1986 = vmatmul.mubr.f32.vlgmr.msra.gmra.mxu0 %v2183_v31  ;;  %2008 = vmatmul.mubr.f32.gmra.mxu1 %v2255_v58 }
 0x105   :  { %1988 = vmatprep.mubr.f32.mxu0 %v2198_v37  ;;  %2010 = vmatprep.mubr.f32.mxu1 %v2270_v1 }
 0x108   :  { %1989 = vmatmul.mubr.f32.gmra.mxu0 %v2222_v44  ;;  %2011 = vmatmul.mubr.f32.gmra.mxu1 %v2289_v11 }
 0x109   :  { %1991 = vmatprep.mubr.f32.mxu0 %v2237_v51 }
 0x10c   :  { %1992 = vmatmul.mubr.f32.gmra.mxu0 %v2255_v58 }
 0x10d   :  { %1994 = vmatprep.mubr.f32.mxu0 %v2270_v1 }
 0x110   :  { %1995 = vmatmul.mubr.f32.gmra.mxu0 %v2289_v11 }
 0x160   :  { %v1843_v14 = vpop.f32.mrf.mxu1 }
 0x162   :  { %v349_v23 = vpop.f32.mrf.mxu1 }
 0x168   :  { %v1827_v19 = vpop.f32.mrf.mxu0  ;;  %v1846_v28 = vpop.f32.mrf.mxu1 }
 0x169   :  { %v356_v21 = vadd.f32 %v1843_v14, %v1827_v19 }
 0x16a   :  { %v198_v24 = vpop.f32.mrf.mxu0  ;;  %v361_v31 = vpop.f32.mrf.mxu1 }
 0x16b   :  { %v2458_v27 = vadd.f32 %v349_v23, %v198_v24 }
 0x170   :  { %v1830_v32 = vpop.f32.mrf.mxu0  ;;  %v1849_v35 = vpop.f32.mrf.mxu1 }
 0x171   :  { %v368_v33 = vadd.f32 %v1846_v28, %v1830_v32 }
 0x172   :  { %v218_v36 = vpop.f32.mrf.mxu0  ;;  %v373_v38 = vpop.f32.mrf.mxu1 }
 0x173   :  { %v2460_v37 = vadd.f32 %v361_v31, %v218_v36 }
 0x178   :  { %v1833_v39 = vpop.f32.mrf.mxu0  ;;  %v1852_v40 = vpop.f32.mrf.mxu1 }
 0x179   :  { %v380_v41 = vadd.f32 %v1849_v35, %v1833_v39 }
 0x17a   :  { %v238_v42 = vpop.f32.mrf.mxu0  ;;  %v385_v43 = vpop.f32.mrf.mxu1 }
 0x17b   :  { %v2462_v44 = vadd.f32 %v373_v38, %v238_v42 }
 0x17c   :  { %v1875_v45 = vpop.f32.mrf.mxu1 }
 0x17e   :  { %v2464_v46 = vpop.f32.mrf.mxu1 }
 0x180   :  { %v1836_v47 = vpop.f32.mrf.mxu0  ;;  %v1878_v48 = vpop.f32.mrf.mxu1 }
 0x181   :  { %v392_v49 = vadd.f32 %v1852_v40, %v1836_v47 }
 0x182   :  { %v258_v50 = vpop.f32.mrf.mxu0  ;;  %v2466_v51 = vpop.f32.mrf.mxu1 }
 0x183   :  { %v2468_v52 = vadd.f32 %v385_v43, %v258_v50 }
 0x184   :  { %v1859_v53 = vpop.f32.mrf.mxu0  ;;  %v1881_v54 = vpop.f32.mrf.mxu1 }
 0x185   :  { %v475_v55 = vadd.f32 %v1859_v53, %v356_v21 }
 0x186   :  { %v2470_v56 = vpop.f32.mrf.mxu0  ;;  %v2472_v57 = vpop.f32.mrf.mxu1 }
 0x187   :  { %v2474_v58 = vadd.f32 %v1875_v45, %v475_v55 }
 0x188   :  { %v1862_v59 = vpop.f32.mrf.mxu0  ;;  %v1884_v60 = vpop.f32.mrf.mxu1 }
 0x189   :  { %v489_v61 = vadd.f32 %v1862_v59, %v368_v33 }
 0x18a   :  { %v2476_v62 = vpop.f32.mrf.mxu0  ;;  %v2478_v63 = vpop.f32.mrf.mxu1 }
 0x18b   :  { %2572 = vst [vmem:[#allocation11_spill] sm:$0xff] %v2478_v63  ;;  %v2480_v0 = vadd.f32 %v1878_v48, %v489_v61 }
 0x18c   :  { %v1865_v1 = vpop.f32.mrf.mxu0  ;;  %v2482_v2 = vpop.f32.mrf.mxu1 }
 0x18d   :  { %v503_v3 = vadd.f32 %v1865_v1, %v380_v41 }
 0x18e   :  { %v495_v4 = vpop.f32.mrf.mxu0  ;;  %v2484_v7 = vpop.f32.mrf.mxu1 }
 0x18f   :  { %v2486_v8 = vadd.f32 %v1881_v54, %v503_v3 }
 0x190   :  { %v1868_v9 = vpop.f32.mrf.mxu0  ;;  %v2488_v10 = vpop.f32.mrf.mxu1 }
 0x191   :  { %2573 = vst [vmem:[#allocation12_spill] sm:$0xff] %v2486_v8  ;;  %2574 = vst [vmem:[#allocation13_spill] sm:$0xff] %v2488_v10  ;;  %v517_v11 = vadd.f32 %v1868_v9, %v392_v49 }
 0x192   :  { %v2490_v12 = vpop.f32.mrf.mxu0  ;;  %v2492_v15 = vpop.f32.mrf.mxu1 }
 0x193   :  { %v2494_v16 = vadd.f32 %v1884_v60, %v517_v11  ;;  %v468_v11 = vadd.f32 %v2470_v56, %v2458_v27 }
 0x194   :  { %v1891_v17 = vpop.f32.mrf.mxu0  ;;  %v2496_v18 = vpop.f32.mrf.mxu1 }
 0x195   :  { %2575 = vst [vmem:[#allocation14_spill] sm:$0xff] %v2494_v16  ;;  %2576 = vst [vmem:[#allocation15_spill] sm:$0xff] %v2496_v18  ;;  %v731_v27 = vadd.f32 %v1891_v17, %v2474_v58 }
 0x196   :  { %v724_v20 = vpop.f32.mrf.mxu0  ;;  %v2498_v22 = vpop.f32.mrf.mxu1 }
 0x197   :  { %2577 = vst [vmem:[#allocation16_spill] sm:$0xff] %v2498_v22 }
 0x198   :  { %v2500_v25 = vpop.f32.mrf.mxu0  ;;  %v2502_v26 = vpop.f32.mrf.mxu1 }
 0x199   :  { %2578 = vst [vmem:[#allocation17_spill] sm:$0xff] %v2502_v26 }
 0x19a   :  { %v2504_v29 = vpop.f32.mrf.mxu0  ;;  %v2506_v30 = vpop.f32.mrf.mxu1 }
 0x19b   :  { %2579 = vst [vmem:[#allocation18_spill] sm:$0xff] %v2506_v30 }
 0x19c   :  { %v2508_v34 = vpop.f32.mrf.mxu0  ;;  %v1939_v6 = vpop.f32.mrf.mxu1 }
 0x19d   :  { %2580 = vst [vmem:[#allocation19_spill] sm:$0xff] %v2508_v34  ;;  %v496_v34 = vadd.f32 %v495_v4, %v2462_v44 }
 0x19e   :  { %v2510_v5 = vpop.f32.mrf.mxu0  ;;  %v1109_v13 = vpop.f32.mrf.mxu1 }
 0x1a0   :  { %v2512_v14 = vpop.f32.mrf.mxu0  ;;  %v1942_v19 = vpop.f32.mrf.mxu1 }
 0x1a1   :  { %2581 = vst [vmem:[#allocation20_spill] sm:$0xff] %v2512_v14 }
 0x1a2   :  { %v2514_v21 = vpop.f32.mrf.mxu0  ;;  %v1121_v23 = vpop.f32.mrf.mxu1 }
 0x1a3   :  { %2582 = vst [vmem:[#allocation21_spill] sm:$0xff] %v2514_v21 }
 0x1a4   :  { %v1923_v24 = vpop.f32.mrf.mxu0  ;;  %v1945_v28 = vpop.f32.mrf.mxu1 }
 0x1a5   :  { %v1116_v9 = vadd.f32 %v1939_v6, %v1923_v24 }
 0x1a6   :  { %v958_v31 = vpop.f32.mrf.mxu0  ;;  %v1133_v32 = vpop.f32.mrf.mxu1 }
 0x1a7   :  { %v1110_v14 = vadd.f32 %v1109_v13, %v958_v31 }
 0x1a8   :  { %v1926_v33 = vpop.f32.mrf.mxu0  ;;  %v1948_v35 = vpop.f32.mrf.mxu1 }
 0x1a9   :  { %v1128_v22 = vadd.f32 %v1942_v19, %v1926_v33 }
 0x1aa   :  { %v978_v36 = vpop.f32.mrf.mxu0  ;;  %v2516_v38 = vpop.f32.mrf.mxu1 }
 0x1ab   :  { %v1122_v6 = vadd.f32 %v1121_v23, %v978_v36 }
 0x1ac   :  { %v1929_v39 = vpop.f32.mrf.mxu0  ;;  %v1971_v40 = vpop.f32.mrf.mxu1 }
 0x1ad   :  { %v1140_v13 = vadd.f32 %v1945_v28, %v1929_v39 }
 0x1ae   :  { %v998_v41 = vpop.f32.mrf.mxu0  ;;  %v1351_v42 = vpop.f32.mrf.mxu1 }
 0x1b0   :  { %v1932_v43 = vpop.f32.mrf.mxu0  ;;  %v1974_v45 = vpop.f32.mrf.mxu1 }
 0x1b2   :  { %v1018_v47 = vpop.f32.mrf.mxu0  ;;  %v1367_v48 = vpop.f32.mrf.mxu1 }
 0x1b4   :  { %v1955_v49 = vpop.f32.mrf.mxu0  ;;  %v1977_v50 = vpop.f32.mrf.mxu1 }
 0x1b5   :  { %v1235_v16 = vadd.f32 %v1955_v49, %v1116_v9 }
 0x1b6   :  { %v1227_v53 = vpop.f32.mrf.mxu0  ;;  %v2518_v54 = vpop.f32.mrf.mxu1 }
 0x1b7   :  { %v1228_v63 = vadd.f32 %v1227_v53, %v1110_v14  ;;  %v1360_v10 = vadd.f32 %v1971_v40, %v1235_v16  ;;  %v846_v16 = vadd.f32 %v2482_v2, %v731_v27 }
 0x1b8   :  { %v1958_v55 = vpop.f32.mrf.mxu0  ;;  %v2520_v59 = vpop.f32.mrf.mxu1 }
 0x1b9   :  { %2583 = vst [vmem:[#allocation22_spill] sm:$0xff] %v2520_v59  ;;  %v482_v59 = vadd.f32 %v2476_v62, %v2460_v37  ;;  %v1249_v24 = vadd.f32 %v1958_v55, %v1128_v22  ;;  %v1352_v14 = vadd.f32 %v1351_v42, %v1228_v63  ;;  %v624_v37 = vadd.f32 %v2472_v57, %v496_v34  ;;  %v2588_v55 = vld [vmem:[#allocation11_spill] sm:$0xff] }
 0x1ba   :  { %v1241_v60 = vpop.f32.mrf.mxu0  ;;  %v2522_v61 = vpop.f32.mrf.mxu1  ;;  %v510_v57 = vadd.f32 %v2490_v12, %v2468_v52  ;;  %v743_v34 = vadd.f32 %v2500_v25, %v2480_v0  ;;  %v2585_v25 = vld [vmem:[#allocation13_spill] sm:$0xff] }
 0x1bb   :  { %2584 = vst [vmem:[#allocation23_spill] sm:$0xff] %v2522_v61  ;;  %v592_v61 = vadd.f32 %v2464_v46, %v468_v11  ;;  %v1242_v9 = vadd.f32 %v1241_v60, %v1122_v6  ;;  %v608_v33 = vadd.f32 %v2466_v51, %v482_v59  ;;  %v1134_v46 = vadd.f32 %v1133_v32, %v998_v41 }
 0x1bc   :  { %v1961_v1 = vpop.f32.mrf.mxu0  ;;  %v2003_v3 = vpop.f32.mrf.mxu1  ;;  %v1376_v22 = vadd.f32 %v1974_v45, %v1249_v24  ;;  %v1146_v32 = vadd.f32 %v2516_v38, %v1018_v47  ;;  %v858_v38 = vadd.f32 %v2585_v25, %v743_v34  ;;  %v2586_v47 = vld [vmem:[#allocation12_spill] sm:$0xff]  ;;  %v640_v59 = vadd.f32 %v2588_v55, %v510_v57 }
 0x1bd   :  { %v725_v56 = vadd.f32 %v724_v20, %v592_v61  ;;  %v1263_v44 = vadd.f32 %v1961_v1, %v1140_v13  ;;  %v737_v17 = vadd.f32 %v2504_v29, %v608_v33  ;;  %v1152_v20 = vadd.f32 %v1948_v35, %v1932_v43  ;;  %v2590_v1 = vld [vmem:[#allocation16_spill] sm:$0xff] }
 0x1be   :  { %v1255_v26 = vpop.f32.mrf.mxu0  ;;  %v1599_v30 = vpop.f32.mrf.mxu1  ;;  %v1368_v39 = vadd.f32 %v1367_v48, %v1242_v9 }
 0x1bf   :  { %v840_v58 = vadd.f32 %v2484_v7, %v725_v56  ;;  %v1256_v63 = vadd.f32 %v1255_v26, %v1134_v46  ;;  %v1392_v40 = vadd.f32 %v1977_v50, %v1263_v44  ;;  %v852_v42 = vadd.f32 %v2492_v15, %v737_v17  ;;  %v2595_v44 = vld [vmem:[#allocation20_spill] sm:$0xff] }
 0x1c0   :  { %v1964_v18 = vpop.f32.mrf.mxu0  ;;  %v2006_v21 = vpop.f32.mrf.mxu1  ;;  %v749_v26 = vadd.f32 %v2510_v5, %v624_v37  ;;  %v2589_v5 = vld [vmem:[#allocation22_spill] sm:$0xff] }
 0x1c1   :  { %v1277_v7 = vadd.f32 %v1964_v18, %v1152_v20  ;;  %v1384_v0 = vadd.f32 %v2518_v54, %v1256_v63  ;;  %v2587_v18 = vld [vmem:[#allocation19_spill] sm:$0xff]  ;;  %v2594_v37 = vld [vmem:[#allocation14_spill] sm:$0xff] }
 0x1c2   :  { %v1269_v8 = vpop.f32.mrf.mxu0  ;;  %v1611_v31 = vpop.f32.mrf.mxu1  ;;  %v755_v50 = vadd.f32 %v2587_v18, %v2586_v47  ;;  %v2592_v54 = vld [vmem:[#allocation23_spill] sm:$0xff] }
 0x1c4   :  { %v1987_v49 = vpop.f32.mrf.mxu0  ;;  %v2009_v28 = vpop.f32.mrf.mxu1 }
 0x1c5   :  { %v1491_v19 = vadd.f32 %v1987_v49, %v1360_v10 }
 0x1c6   :  { %v1484_v62 = vpop.f32.mrf.mxu0  ;;  %v1623_v43 = vpop.f32.mrf.mxu1 }
 0x1c7   :  { %v1606_v4 = vadd.f32 %v2003_v3, %v1491_v19  ;;  %v1485_v23 = vadd.f32 %v1484_v62, %v1352_v14  ;;  %v2591_v3 = vld [vmem:[#allocation21_spill] sm:$0xff]  ;;  %v2593_v19 = vld [vmem:[#allocation15_spill] sm:$0xff]  ;;  %v767_v62 = vadd.f32 %v2595_v44, %v2594_v37 }
 0x1c8   :  { %v1990_v10 = vpop.f32.mrf.mxu0  ;;  %v761_v11 = vadd.f32 %v2591_v3, %v640_v59  ;;  %v2012_v24 = vpop.f32.mrf.mxu1  ;;  %v870_v14 = vadd.f32 %v2593_v19, %v755_v50 }
 0x1c9   :  { %v1600_v36 = vadd.f32 %v1599_v30, %v1485_v23  ;;  %v1503_v51 = vadd.f32 %v1990_v10, %v1376_v22  ;;  %v1646_v41 = vmul.f32 %v1606_v4, %v846_v16  ;;  %v1270_v30 = vadd.f32 %v1269_v8, %v1146_v32  ;;  %v2596_v22 = vld [vmem:[#allocation18_spill] sm:$0xff] }
 0x1ca   :  { %v1496_v2 = vpop.f32.mrf.mxu0  ;;  %v1408_v8 = vadd.f32 %v2589_v5, %v1277_v7  ;;  %v876_v16 = vadd.f32 %v2596_v22, %v761_v11 }
 0x1cb   :  { %v1645_v29 = vmul.f32 %v1600_v36, %v840_v58  ;;  %v1497_v35 = vadd.f32 %v1496_v2, %v1368_v39  ;;  %v1618_v45 = vadd.f32 %v2006_v21, %v1503_v51  ;;  %v864_v21 = vadd.f32 %v2590_v1, %v749_v26  ;;  %v1635_v58 = vpop.f32.mrf.mxu1  ;;  %v2597_v36 = vld [vmem:[#allocation17_spill] sm:$0xff] }
 0x1cc   :  { %v1993_v48 = vpop.f32.mrf.mxu0  ;;  %v1400_v56 = vadd.f32 %v2592_v54, %v1270_v30 }
 0x1cd   :  { %v1653_v52 = vadd.f32 %v1646_v41, %v1645_v29  ;;  %v1612_v12 = vadd.f32 %v1611_v31, %v1497_v35  ;;  %v1515_v53 = vadd.f32 %v1993_v48, %v1392_v40  ;;  %v1648_v6 = vmul.f32 %v1618_v45, %v858_v38 }
 0x1ce   :  { %v1508_v60 = vpop.f32.mrf.mxu0 }
 0x1cf   :  { %v1647_v15 = vmul.f32 %v1612_v12, %v852_v42  ;;  %v1509_v61 = vadd.f32 %v1508_v60, %v1384_v0  ;;  %v1630_v31 = vadd.f32 %v2009_v28, %v1515_v53  ;;  %v882_v28 = vadd.f32 %v2597_v36, %v767_v62 }
 0x1d0   :  { %v1996_v27 = vpop.f32.mrf.mxu0 }
 0x1d1   :  { %v1654_v13 = vadd.f32 %v1653_v52, %v1647_v15  ;;  %v1624_v49 = vadd.f32 %v1623_v43, %v1509_v61  ;;  %v1527_v9 = vadd.f32 %v1996_v27, %v1408_v8  ;;  %v1650_v17 = vmul.f32 %v1630_v31, %v870_v14 }
 0x1d2   :  { %v1520_v33 = vpop.f32.mrf.mxu0 }
 0x1d3   :  { %v1649_v46 = vmul.f32 %v1624_v49, %v864_v21  ;;  %v1655_v4 = vadd.f32 %v1654_v13, %v1648_v6  ;;  %v1521_v23 = vadd.f32 %v1520_v33, %v1400_v56  ;;  %v1642_v10 = vadd.f32 %v2012_v24, %v1527_v9 }
 0x1d5   :  { %v1656_v20 = vadd.f32 %v1655_v4, %v1649_v46  ;;  %v1636_v63 = vadd.f32 %v1635_v58, %v1521_v23  ;;  %v1652_v57 = vmul.f32 %v1642_v10, %v882_v28 }
 0x1d7   :  { %v1651_v51 = vmul.f32 %v1636_v63, %v876_v16  ;;  %v1657_v39 = vadd.f32 %v1656_v20, %v1650_v17 }
 0x1d9   :  { %v1658_v34 = vadd.f32 %v1657_v39, %v1651_v51 }
 0x1db   :  { %v1659_v32 = vadd.f32 %v1658_v34, %v1652_v57 }
 0x1dd   :  { %v1660_v2 = vrot.slane %v1659_v32, 4 }
 0x1df   :  { %v1661_v40 = vadd.f32 %v1660_v2, %v1659_v32 }
 0x1e1   :  { %v1662_v7 = vrot.slane %v1661_v40, 2 }
 0x1e3   :  { %v1663_v41 = vadd.f32 %v1662_v7, %v1661_v40 }
 0x1e5   :  { %v1664_v29 = vrot.slane %v1663_v41, 1 }
 0x1e7   :  { %v1665_v35 = vadd.f32 %v1664_v29, %v1663_v41 }
 0x1e9   :  { %1666 = vst [vmem:[#allocation7] sm:$0x1] %v1665_v35 }
 0x1ea   :  { %2071 = shalt.err (!%p2068_p0)
}
 0x1eb   :  { %1676 = dma.vmem_to_hbm [thread:$0]  %s1674_s25, 16, %s2563_s3, [#allocation4]  }
 0x1ec   :  { %2084 = dma.done.wait [#allocation4], 16  }
 0x1ed   :  { %2085 = vsyncadd [#allocation4], 4294967280 }
 0x1ee   :  { %1680 = vsyncpa [#allocation3], 1 }
 0x1ef   :  { %1681 = vsyncpa [#allocation6], 1 }
 0x1f0   :  { %1682 = vsyncpa [#allocation4], 1 }

</bundles_post_ra>
